<compile_context>
chip_gen: v7x
topology: tpu7x:2x2x1
jax: 0.10.0
libtpu: 0.0.40
codegen_flags: <defaults>
</compile_context>

<pallas_src>
import math
import functools

import numpy as np
import jax
import jax.numpy as jnp
from jax import lax
from jax.experimental import pallas as pl
from jax.experimental.pallas import tpu as pltpu

NEG_INF = -1e30
_VMEM_LIMIT_BYTES = 32 * 1024 * 1024   # safe on v5e/v6e (128 MiB) and v7x (64 MiB)


def _pick_tile(n, target):
    """Largest tile <= target that divides n (falls back to full n)."""
    if n <= target:
        return n
    t = target
    while t >= 8:
        if n % t == 0:
            return t
        t //= 2
    return n


# --------------------- kernel 1: merged Q/K/V projection ---------------------

def _qkv_proj_kernel(x_ref, w_ref, b_ref, o_ref):
    # x: (TQ, E) bf16, w: (E, 3*H*Dk) bf16, b: (1, 3*H*Dk) f32
    # -> o: (TQ, 3*H*Dk) bf16 (lane-dense output block, single fat matmul)
    acc = lax.dot_general(x_ref[...], w_ref[...], (((1,), (0,)), ((), ())),
                          preferred_element_type=jnp.float32)
    o_ref[...] = (acc + b_ref[...]).astype(o_ref.dtype)


def pallas_qkv_projection(x_bf16, w_all, b_all, *, tq):
    n, e = x_bf16.shape
    w3 = w_all.shape[-1]                       # 3 * H * Dk
    return pl.pallas_call(
        _qkv_proj_kernel,
        out_shape=jax.ShapeDtypeStruct((n, w3), jnp.bfloat16),
        grid=(n // tq,),
        in_specs=[
            pl.BlockSpec((tq, e), lambda r: (r, 0)),
            pl.BlockSpec((e, w3), lambda r: (0, 0)),
            pl.BlockSpec((1, w3), lambda r: (0, 0)),
        ],
        out_specs=pl.BlockSpec((tq, w3), lambda r: (r, 0)),
        compiler_params=pltpu.CompilerParams(
            dimension_semantics=("parallel",),
            vmem_limit_bytes=_VMEM_LIMIT_BYTES),
    )(x_bf16, w_all, b_all)


# ------ kernel 2: block-sparse attention + output projection (fused) ---------

def _sparse_attn_kernel(kv_tiles_ref, kv_nums_ref,                # scalar prefetch (SMEM)
                        q_ref, k_ref, v_ref, cols_ref, bias_ref,  # inputs (VMEM)
                        wo_ref, bo_ref,
                        o_ref,                                    # output (VMEM)
                        m_sc, l_sc, acc_sc,                       # scratch
                        *, num_heads, d_k, tk, kmax):
    qi = pl.program_id(0)
    j = pl.program_id(1)
    n_j = pl.num_programs(1)

    @pl.when(j == 0)
    def _():
        m_sc[...] = jnp.full_like(m_sc, NEG_INF)   # running max   (H, TQ, 1)
        l_sc[...] = jnp.zeros_like(l_sc)           # running denom (H, TQ, 1)
        acc_sc[...] = jnp.zeros_like(acc_sc)       # running att@v (H, TQ, Dk)

    # Only non-empty KV tiles are processed (block-sparse schedule); padded
    # grid steps repeat the last tile id so the pipeline does not re-DMA.
    @pl.when(j < kv_nums_ref[qi])
    def _():
        kv_tile = kv_tiles_ref[qi, j]
        q_all = q_ref[...]                         # (TQ, H*Dk) bf16
        k_all = k_ref[...]                         # (TK, H*Dk) bf16
        v_all = v_ref[...]                         # (TK, H*Dk) bf16
        tq = q_all.shape[0]

        # Rebuild the additive sparse-pattern bias tile from the padded
        # per-row neighbor lists.  Hit tests are shared across ALL heads.
        col_ids = kv_tile * tk + lax.broadcasted_iota(jnp.int32, (tq, tk), 1)
        cols = cols_ref[...]                       # (TQ, KMAX) int32, -1 = pad
        btile = bias_ref[...]                      # (H, TQ, KMAX) f32
        addb = jnp.full((num_heads, tq, tk), NEG_INF, jnp.float32)
        if kmax <= 32:
            # Small neighbor lists: static unroll (static lane slices).
            for slot in range(kmax):
                hit = cols[:, slot:slot + 1] == col_ids           # (TQ, TK)
                b = btile[:, :, slot:slot + 1]                    # (H, TQ, 1)
                addb = jnp.where(hit[None], b, addb)
        else:
            # Large neighbor lists: rolled loop bounds vreg live ranges.
            def body(slot, a):
                hit = lax.dynamic_slice_in_dim(cols, slot, 1, axis=1) == col_ids
                b = lax.dynamic_slice_in_dim(btile, slot, 1, axis=2)
                return jnp.where(hit[None], b, a)
            addb = lax.fori_loop(0, kmax, body, addb)

        # Per-head flash update (static loop; heads share the mask above).
        for h in range(num_heads):
            qh = q_all[:, h * d_k:(h + 1) * d_k]                  # (TQ, Dk)
            kh = k_all[:, h * d_k:(h + 1) * d_k]                  # (TK, Dk)
            vh = v_all[:, h * d_k:(h + 1) * d_k]                  # (TK, Dk)
            # 1/sqrt(d_k) is folded into wq/bq; contract last dims (no transpose)
            s = lax.dot_general(qh, kh, (((1,), (1,)), ((), ())),
                                preferred_element_type=jnp.float32)
            s = s + addb[h]                                       # masked logits
            m_prev = m_sc[h]                                      # (TQ, 1)
            m_new = jnp.maximum(m_prev, jnp.max(s, axis=-1, keepdims=True))
            alpha = jnp.exp(m_prev - m_new)
            p = jnp.where(addb[h] > 0.5 * NEG_INF, jnp.exp(s - m_new), 0.0)
            l_sc[h] = alpha * l_sc[h] + jnp.sum(p, axis=-1, keepdims=True)
            acc_sc[h] = alpha * acc_sc[h] + lax.dot_general(
                p.astype(jnp.bfloat16), vh, (((1,), (0,)), ((), ())),
                preferred_element_type=jnp.float32)
            m_sc[h] = m_new

    @pl.when(j == n_j - 1)
    def _():
        # Normalize per head, pack heads lane-dense, single fat output matmul.
        ys = []
        for h in range(num_heads):
            l = l_sc[h]
            # empty sparse-pattern rows -> 0 (xformers sparse softmax behavior)
            inv = jnp.where(l > 0.0,
                            pl.reciprocal(jnp.maximum(l, 1e-30), approx=True),
                            0.0)
            ys.append(acc_sc[h] * inv)                            # (TQ, Dk) f32
        y = jnp.concatenate(ys, axis=-1).astype(jnp.bfloat16)     # (TQ, H*Dk)
        out = lax.dot_general(y, wo_ref[...], (((1,), (0,)), ((), ())),
                              preferred_element_type=jnp.float32)  # (TQ, E)
        o_ref[...] = out + bo_ref[...]


def pallas_sparse_attention(qkv, nbr_cols, nbr_bias, kv_tiles, kv_nums,
                            wo, bo, *, num_heads, d_k, tq, tk, nkv_max):
    n = qkv.shape[0]
    hd = num_heads * d_k
    e = wo.shape[-1]
    kmax = nbr_cols.shape[-1]
    nq = n // tq

    kern = functools.partial(_sparse_attn_kernel, num_heads=num_heads,
                             d_k=d_k, tk=tk, kmax=kmax)
    return pl.pallas_call(
        kern,
        out_shape=jax.ShapeDtypeStruct((n, e), jnp.float32),
        grid_spec=pltpu.PrefetchScalarGridSpec(
            num_scalar_prefetch=2,
            grid=(nq, nkv_max),                    # kv (reduction) axis last
            in_specs=[
                # packed qkv (N, 3*H*Dk): section 0 = q, 1 = k, 2 = v
                pl.BlockSpec((tq, hd), lambda qi, j, kvt, kvn: (qi, 0)),
                pl.BlockSpec((tk, hd), lambda qi, j, kvt, kvn: (kvt[qi, j], 1)),
                pl.BlockSpec((tk, hd), lambda qi, j, kvt, kvn: (kvt[qi, j], 2)),
                pl.BlockSpec((tq, kmax), lambda qi, j, kvt, kvn: (qi, 0)),
                pl.BlockSpec((num_heads, tq, kmax),
                             lambda qi, j, kvt, kvn: (0, qi, 0)),
                pl.BlockSpec((hd, e), lambda qi, j, kvt, kvn: (0, 0)),
                pl.BlockSpec((1, e), lambda qi, j, kvt, kvn: (0, 0)),
            ],
            out_specs=pl.BlockSpec((tq, e), lambda qi, j, kvt, kvn: (qi, 0)),
            scratch_shapes=[
                pltpu.VMEM((num_heads, tq, 1), jnp.float32),    # m
                pltpu.VMEM((num_heads, tq, 1), jnp.float32),    # l
                pltpu.VMEM((num_heads, tq, d_k), jnp.float32),  # att @ v
            ]),
        compiler_params=pltpu.CompilerParams(
            dimension_semantics=("parallel", "arbitrary"),
            vmem_limit_bytes=_VMEM_LIMIT_BYTES),
    )(kv_tiles, kv_nums, qkv, qkv, qkv, nbr_cols, nbr_bias, wo, bo)


# ----------------------------- parameters ------------------------------------

def xavier_uniform(key, out_dim, in_dim):
    limit = math.sqrt(6.0 / (in_dim + out_dim))
    # nn.Linear weight is (out, in); store transposed (in, out) for x @ W.
    w = jax.random.uniform(key, (out_dim, in_dim), jnp.float32, -limit, limit)
    return w.T


def init_params(key, embed_dim, num_heads):
    d_k = embed_dim // num_heads
    ks = jax.random.split(key, 4)
    return {
        "wq": xavier_uniform(ks[0], num_heads * d_k, embed_dim),
        "bq": jnp.zeros((num_heads * d_k,), jnp.float32),
        "wk": xavier_uniform(ks[1], num_heads * d_k, embed_dim),
        "bk": jnp.zeros((num_heads * d_k,), jnp.float32),
        "wv": xavier_uniform(ks[2], num_heads * d_k, embed_dim),
        "bv": jnp.zeros((num_heads * d_k,), jnp.float32),
        "wo": xavier_uniform(ks[3], embed_dim, num_heads * d_k),
        "bo": jnp.zeros((embed_dim,), jnp.float32),
        "num_heads": num_heads,
        "d_k": d_k,
    }


# --------------------------- host-side metadata prep -------------------------

def coo_to_padded(row_index, col_index, att_bias, n_rows):
    """COO pattern -> padded per-row neighbor lists (pad col = -1, bias 0).

    O(nnz) host prep (like _from_coo builds the CSR tensor upstream).
    Duplicate (row, col) entries are assumed absent.
    """
    rows = np.asarray(jax.device_get(row_index)).astype(np.int64)
    cols = np.asarray(jax.device_get(col_index)).astype(np.int64)
    bias = np.asarray(jax.device_get(att_bias)).astype(np.float32)
    h = bias.shape[0]
    order = np.argsort(rows, kind="stable")
    r, c, b = rows[order], cols[order], bias[:, order]
    counts = np.bincount(r, minlength=n_rows) if r.size else np.zeros(n_rows, np.int64)
    kmax = max(int(counts.max()) if r.size else 1, 1)
    starts = np.zeros(n_rows, np.int64)
    starts[1:] = np.cumsum(counts)[:-1]
    slot = np.arange(r.size) - starts[r]
    nbr_cols = np.full((n_rows, kmax), -1, np.int32)
    nbr_bias = np.zeros((h, n_rows, kmax), np.float32)
    if r.size:
        nbr_cols[r, slot] = c.astype(np.int32)
        nbr_bias[:, r, slot] = b
    return jnp.asarray(nbr_cols), jnp.asarray(nbr_bias), kmax


def build_kv_schedule(row_index, col_index, n, tq, tk):
    """Per q-tile list of NON-EMPTY kv tiles (block-sparse schedule).

    Padded slots repeat the last valid tile id so the pipeline skips the DMA.
    """
    rows = np.asarray(jax.device_get(row_index)).astype(np.int64)
    cols = np.asarray(jax.device_get(col_index)).astype(np.int64)
    nq, nk = n // tq, n // tk
    occ = np.zeros((nq, nk), bool)
    if rows.size:
        occ[rows // tq, cols // tk] = True
    counts = occ.sum(axis=1).astype(np.int32)
    nkv_max = max(int(counts.max()) if counts.size else 1, 1)
    kv_tiles = np.zeros((nq, nkv_max), np.int32)
    for i in range(nq):
        ids = np.nonzero(occ[i])[0].astype(np.int32)
        if ids.size == 0:
            ids = np.zeros((1,), np.int32)
        kv_tiles[i, :ids.size] = ids
        kv_tiles[i, ids.size:] = ids[-1]
    return jnp.asarray(kv_tiles), jnp.asarray(counts), nkv_max


# ----------------------------- forward ----------------------------------------

def sparse_self_attention(params, x, row_index, col_index, att_bias):
    """x: (N, E); row/col_index: (nnz,) int32; att_bias: (H, nnz)."""
    n, e = x.shape
    h, d_k = params["num_heads"], params["d_k"]
    scale = 1.0 / math.sqrt(d_k)

    # Fold 1/sqrt(d_k) into the query projection; pack q|k|v weights so the
    # projection kernel does ONE lane-dense matmul per row tile.
    w_all = jnp.concatenate([params["wq"] * scale, params["wk"], params["wv"]],
                            axis=1).astype(jnp.bfloat16)            # (E, 3*H*Dk)
    b_all = jnp.concatenate([params["bq"] * scale, params["bk"], params["bv"]]
                            ).reshape(1, -1).astype(jnp.float32)     # (1, 3*H*Dk)
    wo = params["wo"].astype(jnp.bfloat16)                           # (H*Dk, E)
    bo = params["bo"].reshape(1, e).astype(jnp.float32)

    # Tile sizes (review: prefer large kv tiles; q tile multiplies f32 scratch).
    tq = _pick_tile(n, 256)
    tk = _pick_tile(n, 512)
    tq_p = _pick_tile(n, 256)

    nbr_cols, nbr_bias, _ = coo_to_padded(row_index, col_index, att_bias, n)
    kv_tiles, kv_nums, nkv_max = build_kv_schedule(row_index, col_index, n, tq, tk)

    x_bf = x.astype(jnp.bfloat16)
    qkv = pallas_qkv_projection(x_bf, w_all, b_all, tq=tq_p)   # (N, 3*H*Dk) bf16
    return pallas_sparse_attention(qkv, nbr_cols, nbr_bias, kv_tiles, kv_nums,
                                   wo, bo, num_heads=h, d_k=d_k,
                                   tq=tq, tk=tk, nkv_max=nkv_max)   # (N, E) f32


# ---------------------- pure-JAX f32 reference ---------------------------------

def reference(params, x, row_index, col_index, att_bias):
    n, _ = x.shape
    h, d_k = params["num_heads"], params["d_k"]

    def project(w, b):
        return (x @ w + b).reshape(n, h, d_k).transpose(1, 0, 2)

    q = project(params["wq"], params["bq"]) / math.sqrt(d_k)
    k = project(params["wk"], params["bk"])
    v = project(params["wv"], params["bv"])
    mask = jnp.full((h, n, n), NEG_INF, jnp.float32)
    mask = mask.at[:, row_index, col_index].set(att_bias.astype(jnp.float32))
    s = jnp.einsum("hqd,hkd->hqk", q, k) + mask
    att = jax.nn.softmax(s, axis=-1)
    has_entry = jnp.zeros((n,), bool).at[row_index].set(True)
    att = jnp.where(has_entry[None, :, None], att, 0.0)   # empty row -> 0
    y = jnp.einsum("hqk,hkd->hqd", att, v)
    y = y.transpose(1, 0, 2).reshape(n, h * d_k)
    return y @ params["wo"] + params["bo"]


if __name__ == "__main__":
    N, E, H = 16, 128, 4            # tokens, embed_dim, num_heads  (d_k = 32)
    key = jax.random.PRNGKey(0)
    k_param, k_x, k_bias = jax.random.split(key, 3)

    params = init_params(k_param, E, H)
    x = jax.random.normal(k_x, (N, E), jnp.float32)

    # COO sparse pattern: rows 0..N-2 attend to {i, i+1, i+3} mod N;
    # the last row has NO pattern entries (exercises the empty-row path).
    rows, cols = [], []
    for i in range(N - 1):
        for off in (0, 1, 3):
            rows.append(i)
            cols.append((i + off) % N)
    row_index = jnp.asarray(rows, jnp.int32)
    col_index = jnp.asarray(cols, jnp.int32)
    att_bias = 0.1 * jax.random.normal(k_bias, (H, row_index.shape[0]),
                                       jnp.float32)

    out = sparse_self_attention(params, x, row_index, col_index, att_bias)
    out = jax.block_until_ready(out)

    ref = reference(params, x, row_index, col_index, att_bias)
    assert out.shape == (N, E)
    assert bool(jnp.all(jnp.isfinite(out)))
    # bf16 MXU operands with f32 accumulation vs the f32 reference.
    assert jnp.allclose(out, ref, rtol=1e-1, atol=1e-1), float(
        jnp.max(jnp.abs(out - ref)))
    print("KERNEL_OK")
</pallas_src>

<mosaic_0001>
module attributes {stable_mosaic.version = 11 : i64} {
  func.func @_qkv_proj_kernel(%arg0: i32, %arg1: memref<16x128xbf16, #tpu.memory_space<vmem>>, %arg2: memref<128x384xbf16, #tpu.memory_space<vmem>>, %arg3: memref<1x384xf32, #tpu.memory_space<vmem>>, %arg4: memref<16x384xbf16, #tpu.memory_space<vmem>>) attributes {dimension_semantics = [#tpu.dimension_semantics<parallel>], iteration_bounds = array<i64: 1>, scalar_prefetch = 0 : i64, scratch_operands = 0 : i64, tpu.core_type = #tpu.core_type<tc>, window_params = [{transform_indices = @transform_0, window_bounds = array<i64: 16, 128>}, {pipeline_mode = #tpu.pipeline_mode<synchronous>, transform_indices = @transform_1, window_bounds = array<i64: 128, 384>}, {pipeline_mode = #tpu.pipeline_mode<synchronous>, transform_indices = @transform_2, window_bounds = array<i64: 1, 384>}, {transform_indices = @transform_3, window_bounds = array<i64: 16, 384>}]} {
    %c0 = arith.constant 0 : index
    %c0_0 = arith.constant 0 : index
    %0 = vector.load %arg1[%c0, %c0_0] : memref<16x128xbf16, #tpu.memory_space<vmem>>, vector<16x128xbf16>
    %c0_1 = arith.constant 0 : index
    %c0_2 = arith.constant 0 : index
    %1 = vector.load %arg2[%c0_1, %c0_2] : memref<128x384xbf16, #tpu.memory_space<vmem>>, vector<128x384xbf16>
    %cst = arith.constant dense<0.000000e+00> : vector<16x384xf32>
    %2 = tpu.matmul %0, %1, %cst {dimension_numbers = #tpu.dot_dimension_numbers<[1], [0], [0], [1], [0, 0, 1, 1], [], []>} : vector<16x128xbf16>, vector<128x384xbf16>, vector<16x384xf32> -> vector<16x384xf32>
    %c0_3 = arith.constant 0 : index
    %c0_4 = arith.constant 0 : index
    %3 = vector.load %arg3[%c0_3, %c0_4] : memref<1x384xf32, #tpu.memory_space<vmem>>, vector<1x384xf32>
    %4 = vector.broadcast %3 : vector<1x384xf32> to vector<16x384xf32>
    %5 = arith.addf %2, %4 : vector<16x384xf32>
    %6 = arith.truncf %5 : vector<16x384xf32> to vector<16x384xbf16>
    %c0_5 = arith.constant 0 : index
    %c0_6 = arith.constant 0 : index
    %7 = vector.load %arg4[%c0_5, %c0_6] : memref<16x384xbf16, #tpu.memory_space<vmem>>, vector<16x384xbf16>
    tpu.vector_store %arg4[%c0_5, %c0_6], %6 {strides = array<i32>} : memref<16x384xbf16, #tpu.memory_space<vmem>>, vector<16x384xbf16>,
    return
  }
  func.func @transform_0(%arg0: i32) -> (i32, i32) {
    %c0_i32 = arith.constant 0 : i32
    %c0_i32_0 = arith.constant 0 : i32
    return %arg0, %c0_i32 : i32, i32
  }
  func.func @transform_1(%arg0: i32) -> (i32, i32) {
    %c0_i32 = arith.constant 0 : i32
    %c0_i32_0 = arith.constant 0 : i32
    %c0_i32_1 = arith.constant 0 : i32
    return %c0_i32, %c0_i32_0 : i32, i32
  }
  func.func @transform_2(%arg0: i32) -> (i32, i32) {
    %c0_i32 = arith.constant 0 : i32
    %c0_i32_0 = arith.constant 0 : i32
    %c0_i32_1 = arith.constant 0 : i32
    return %c0_i32, %c0_i32_0 : i32, i32
  }
  func.func @transform_3(%arg0: i32) -> (i32, i32) {
    %c0_i32 = arith.constant 0 : i32
    %c0_i32_0 = arith.constant 0 : i32
    return %arg0, %c0_i32 : i32, i32
  }
}

</mosaic_0001>

<bundles_post_ra>
// kernel: tpu_custom_call.1
= control target key start
LH: loop header
LB: loop body
LE: loop exit
PB: predicated region body
PF: predicated region fallthrough
CT: control target
= control target key end

     0   :  { %8 = vsyncpa [#allocation3], 0  ;;  %s607_s0 = inlined_call_operand.hbm [shape: bf16[16,128], index: 0, kind: input, shape index: {}]   ;;  %s608_s1 = inlined_call_operand.hbm [shape: bf16[128,384], index: 1, kind: input, shape index: {}]   ;;  %s609_s2 = inlined_call_operand.vmem [shape: f32[1,384], index: 2, kind: input, shape index: {}]   ;;  %s610_s3 = inlined_call_operand.hbm [shape: bf16[16,384], index: 3, kind: output, shape index: {}]  }
   0x1   :  { %9 = vsyncpa [#allocation6], 0 }
   0x2   :  { %10 = vsyncpa [#allocation4], 0  ;;  %s532_s12 = smov [#allocation2]   ;;  %s460_s16 = scalar_lea.hbm %s607_s0, 128 }
   0x3   :  { %s16_s13 = sshll.u32 %s532_s12, 4  ;;  %p461_p0 = scmp.ne.s32.totalorder %s607_s0, %s460_s16  ;;  %s17_s13 = int_to_ptr.vmem [resolvable:$true] %s16_s13 }
   0x4   :  { %p464_p1 = scmp.lt.u32.totalorder %s460_s16, %s607_s0 }
   0x6   :  { %p466_p2 = pnand %p464_p1, %p461_p0 }
   0x8   :  { %469 = shalt.err (!%p466_p2)
}
   0x9   :  { %s470_s21 = scalar_lea.vmem %s17_s13, 128  ;;  %p475_p4 = scmp.lt.s32.totalorder %s17_s13, %s17_s13 }
   0xa   :  { %p471_p3 = scmp.ne.s32.totalorder %s17_s13, %s470_s21  ;;  %p476_p5 = scmp.lt.s32.totalorder %s470_s21, %s470_s21 }
   0xc   :  { %p477_p6 = por %p476_p5, %p475_p4 }
   0xe   :  { %p478_p7 = pnand %p477_p6, %p471_p3 }
  0x10   :  { %481 = shalt.err (!%p478_p7)
}
  0x11   :  { %s533_s22 = smov 64   ;;  %s534_s23 = smov 4  }
  0x12   :  { %22 = dma.hbm_to_vmem [thread:$0]  %s607_s0, 128, %s17_s13, [#allocation3], %s533_s22, %s533_s22, %s534_s23  }
  0x13   :  { %s535_s26 = smov [#allocation5]   ;;  %s482_s30 = scalar_lea.hbm %s608_s1, 3072 }
  0x14   :  { %s28_s27 = sshll.u32 %s535_s26, 4  ;;  %p483_p8 = scmp.ne.s32.totalorder %s608_s1, %s482_s30  ;;  %s29_s27 = int_to_ptr.vmem [resolvable:$true] %s28_s27 }
  0x15   :  { %p486_p9 = scmp.lt.u32.totalorder %s482_s30, %s608_s1 }
  0x17   :  { %p488_p10 = pnand %p486_p9, %p483_p8 }
  0x19   :  { %491 = shalt.err (!%p488_p10)
}
  0x1a   :  { %s492_s8 = scalar_lea.vmem %s29_s27, 3072  ;;  %p497_p12 = scmp.lt.s32.totalorder %s29_s27, %s29_s27 }
  0x1b   :  { %p493_p11 = scmp.ne.s32.totalorder %s29_s27, %s492_s8  ;;  %p498_p13 = scmp.lt.s32.totalorder %s492_s8, %s492_s8 }
  0x1d   :  { %p499_p0 = por %p498_p13, %p497_p12 }
  0x1f   :  { %p500_p1 = pnand %p499_p0, %p493_p11 }
  0x21   :  { %503 = shalt.err (!%p500_p1)
}
  0x22   :  { %s536_s0 = smov 192   ;;  %s537_s9 = smov 12  }
  0x23   :  { %34 = dma.hbm_to_vmem [thread:$0]  %s608_s1, 3072, %s29_s27, [#allocation6], %s536_s0, %s536_s0, %s537_s9  }
  0x24   :  { %526 = dma.done.wait [#allocation3], 128  }
  0x25   :  { %527 = vsyncadd [#allocation3], 4294967168 }
  0x26   :  { %528 = dma.done.wait [#allocation6], 3072  }
  0x27   :  { %529 = vsyncadd [#allocation6], 4294964224  ;;  %v538_v0 = vmov 0.0   ;;  %vm539_vm0 = vmmov 0   ;;  %v540_v1 = vmov 0   ;;  %v459_v26 = vld [vmem:[#allocation2] sm:$0xff]   ;;  %v80_v27 = vlaneseq }
  0x28   :  { %397 = vmatprep.subr.bf16.mxu1 %v538_v0  ;;  %413 = vmatprep.mubr.msk.bf16.mxu1 %vm539_vm0, %v538_v0  ;;  %v427_v2 = vld [vmem:[#allocation5 + $0x4] ss:$12 sps:$4 sm:$0xff]   ;;  %v429_v3 = vld [vmem:[#allocation5 + $0x8] ss:$12 sps:$4 sm:$0xff]   ;;  %v430_v4 = vld [vmem:[#allocation5] ss:$12 sps:$4 sm:$0xff]  }
  0x29   :  { %261 = vmatprep.mubr.bf16.mxu0 %v540_v1  ;;  %229 = vmatprep.subr.bf16.mxu0 %v427_v2  ;;  %v431_v5 = vld [vmem:[#allocation5 + $0x1c] ss:$12 sps:$4 sm:$0xff]   ;;  %v433_v6 = vld [vmem:[#allocation5 + $0x20] ss:$12 sps:$4 sm:$0xff]   ;;  %v434_v7 = vld [vmem:[#allocation5 + $0x18] ss:$12 sps:$4 sm:$0xff]  }
  0x2a   :  { %398 = vmatpush3.bf16.msra.mxu1 %v429_v3  ;;  %230 = vmatpush1.bf16.msra.mxu0 %v430_v4  ;;  %v435_v8 = vld [vmem:[#allocation5 + $0x34] ss:$12 sps:$4 sm:$0xff]   ;;  %v437_v9 = vld [vmem:[#allocation5 + $0x38] ss:$12 sps:$4 sm:$0xff]   ;;  %v438_v10 = vld [vmem:[#allocation5 + $0x30] ss:$12 sps:$4 sm:$0xff]  }
  0x2b   :  { %399 = vmatprep.subr.bf16.mxu1 %v538_v0  ;;  %231 = vmatprep.subr.bf16.mxu0 %v431_v5  ;;  %v439_v11 = vld [vmem:[#allocation5 + $0x4c] ss:$12 sps:$4 sm:$0xff]   ;;  %v441_v12 = vld [vmem:[#allocation5 + $0x50] ss:$12 sps:$4 sm:$0xff]   ;;  %v442_v13 = vld [vmem:[#allocation5 + $0x48] ss:$12 sps:$4 sm:$0xff]  }
  0x2c   :  { %v443_v14 = vld [vmem:[#allocation5 + $0x64] ss:$12 sps:$4 sm:$0xff]   ;;  %v445_v15 = vld [vmem:[#allocation5 + $0x68] ss:$12 sps:$4 sm:$0xff]   ;;  %v446_v16 = vld [vmem:[#allocation5 + $0x60] ss:$12 sps:$4 sm:$0xff]  }
  0x2d   :  { %v447_v17 = vld [vmem:[#allocation5 + $0x7c] ss:$12 sps:$4 sm:$0xff]   ;;  %v449_v18 = vld [vmem:[#allocation5 + $0x80] ss:$12 sps:$4 sm:$0xff]   ;;  %v450_v19 = vld [vmem:[#allocation5 + $0x78] ss:$12 sps:$4 sm:$0xff]  }
  0x2e   :  { %400 = vmatpush3.bf16.msra.mxu1 %v433_v6  ;;  %232 = vmatpush1.bf16.msra.mxu0 %v434_v7  ;;  %v451_v20 = vld [vmem:[#allocation5 + $0x94] ss:$12 sps:$4 sm:$0xff]   ;;  %v453_v21 = vld [vmem:[#allocation5 + $0x98] ss:$12 sps:$4 sm:$0xff]   ;;  %v454_v22 = vld [vmem:[#allocation5 + $0x90] ss:$12 sps:$4 sm:$0xff]  }
  0x2f   :  { %401 = vmatprep.subr.bf16.mxu1 %v538_v0  ;;  %233 = vmatprep.subr.bf16.mxu0 %v435_v8  ;;  %v455_v23 = vld [vmem:[#allocation5 + $0xac] ss:$12 sps:$4 sm:$0xff]   ;;  %v457_v24 = vld [vmem:[#allocation5 + $0xb0] ss:$12 sps:$4 sm:$0xff]   ;;  %v458_v25 = vld [vmem:[#allocation5 + $0xa8] ss:$12 sps:$4 sm:$0xff]  }
  0x30   :  { %v81_v28 = vshrl.u32 %v80_v27, 7  ;;  %v78_v30 = vld [vmem:[%s609_s2] sm:$0x7]  ;;  %s541_s2 = smov [#allocation7]  }
  0x31   :  { %s342_s13 = sshll.u32 %s541_s2, 4  ;;  %s343_s13 = int_to_ptr.vmem [resolvable:$true] %s342_s13 }
  0x32   :  { %402 = vmatpush3.bf16.msra.mxu1 %v437_v9  ;;  %234 = vmatpush1.bf16.msra.mxu0 %v438_v10  ;;  %v90_v29 = vsub.s32 2, %v81_v28  ;;  %v82_v31 = vsub.s32 0, %v81_v28  ;;  %v86_v32 = vsub.s32 1, %v81_v28  ;;  %s504_s14 = scalar_lea.vmem %s343_s13, 384  ;;  %p509_p3 = scmp.lt.s32.totalorder %s343_s13, %s343_s13 }
  0x33   :  { %403 = vmatprep.subr.bf16.mxu1 %v538_v0  ;;  %235 = vmatprep.subr.bf16.mxu0 %v439_v11  ;;  %p505_p2 = scmp.ne.s32.totalorder %s343_s13, %s504_s14  ;;  %p510_p4 = scmp.lt.s32.totalorder %s504_s14, %s504_s14 }
  0x34   :  { %v91_v33 = vrot.slane %v78_v30, %v90_v29  ;;  %v83_v34 = vrot.slane %v78_v30, %v82_v31  ;;  %v87_v35 = vrot.slane %v78_v30, %v86_v32 }
  0x35   :  { %p511_p5 = por %p510_p4, %p509_p3 }
  0x36   :  { %404 = vmatpush3.bf16.msra.mxu1 %v441_v12  ;;  %236 = vmatpush1.bf16.msra.mxu0 %v442_v13 }
  0x37   :  { %405 = vmatprep.subr.bf16.mxu1 %v538_v0  ;;  %237 = vmatprep.subr.bf16.mxu0 %v443_v14  ;;  %p512_p6 = pnand %p511_p5, %p505_p2 }
  0x3a   :  { %406 = vmatpush3.bf16.msra.mxu1 %v445_v15  ;;  %238 = vmatpush1.bf16.msra.mxu0 %v446_v16 }
  0x3b   :  { %407 = vmatprep.subr.bf16.mxu1 %v538_v0  ;;  %239 = vmatprep.subr.bf16.mxu0 %v447_v17 }
  0x3e   :  { %408 = vmatpush3.bf16.msra.mxu1 %v449_v18  ;;  %240 = vmatpush1.bf16.msra.mxu0 %v450_v19 }
  0x3f   :  { %409 = vmatprep.subr.bf16.mxu1 %v538_v0  ;;  %241 = vmatprep.subr.bf16.mxu0 %v451_v20 }
  0x42   :  { %410 = vmatpush3.bf16.msra.mxu1 %v453_v21  ;;  %242 = vmatpush1.bf16.msra.mxu0 %v454_v22 }
  0x43   :  { %411 = vmatprep.subr.bf16.mxu1 %v538_v0  ;;  %243 = vmatprep.subr.bf16.mxu0 %v455_v23 }
  0x46   :  { %412 = vmatpush3.bf16.msra.mxu1 %v457_v24  ;;  %244 = vmatpush1.bf16.msra.mxu0 %v458_v25 }
  0x49   :  { %414 = vmatmul.mubr.bf16.vlgmr.msra.gmra.mrb[0].mxu1 %v459_v26  ;;  %262 = vmatmul.mubr.bf16.vlgmr.msra.gmra.mrb[0].mxu0 %v459_v26 }
 0x11c   :  { %v306_v36 = vpop.f32.mrb[0].mxu1  ;;  %v263_v38 = vpop.f32.mrb[0].mxu0 }
 0x11d   :  { %v307_v37 = vadd.f32 %v306_v36, %v91_v33  ;;  %v415_v39 = vpop.f32.mrb[1].mxu1  ;;  %v264_v40 = vadd.f32 %v263_v38, %v83_v34  ;;  %v265_v41 = vpop.f32.mrb[1].mxu0 }
 0x11e   :  { %v309_v42 = vpop.f32.mrb[2].mxu1  ;;  %v266_v44 = vadd.f32 %v265_v41, %v87_v35  ;;  %v267_v46 = vpop.f32.mrb[2].mxu0 }
 0x11f   :  { %v385_v43 = vpack.c.bf16 %v307_v37, %v307_v37  ;;  %v310_v45 = vadd.f32 %v309_v42, %v91_v33  ;;  %v416_v47 = vpop.f32.mrb[3].mxu1  ;;  %v268_v48 = vadd.f32 %v267_v46, %v83_v34  ;;  %v269_v49 = vpop.f32.mrb[3].mxu0 }
 0x120   :  { %v384_v50 = vpack.c.bf16 %v266_v44, %v264_v40  ;;  %v270_v52 = vadd.f32 %v269_v49, %v87_v35 }
 0x121   :  { %334 = vst [vmem:[#allocation7 + $0x8] sm:$0xf] %v385_v43  ;;  %v387_v51 = vpack.c.bf16 %v310_v45, %v310_v45 }
 0x122   :  { %333 = vst [vmem:[#allocation7] sm:$0xff] %v384_v50  ;;  %v386_v53 = vpack.c.bf16 %v270_v52, %v268_v48 }
 0x123   :  { %336 = vst [vmem:[#allocation7 + $0x14] sm:$0xf] %v387_v51 }
 0x124   :  { %335 = vst [vmem:[#allocation7 + $0xc] sm:$0xff] %v386_v53 }
 0x125   :  { %515 = shalt.err (!%p512_p6)
}
 0x126   :  { %s516_s17 = scalar_lea.hbm %s610_s3, 384 }
 0x127   :  { %p517_p7 = scmp.ne.s32.totalorder %s610_s3, %s516_s17  ;;  %p520_p8 = scmp.lt.u32.totalorder %s516_s17, %s610_s3 }
 0x129   :  { %p522_p9 = pnand %p520_p8, %p517_p7 }
 0x12b   :  { %525 = shalt.err (!%p522_p9)
}
 0x12c   :  { %348 = dma.vmem_to_hbm [thread:$0]  %s343_s13, 384, %s610_s3, [#allocation4], %s536_s0, %s536_s0, %s537_s9  }
 0x12d   :  { %530 = dma.done.wait [#allocation4], 384  }
 0x12e   :  { %531 = vsyncadd [#allocation4], 4294966912 }
 0x12f   :  { %352 = vsyncpa [#allocation3], 1 }
 0x130   :  { %353 = vsyncpa [#allocation6], 1 }
 0x131   :  { %354 = vsyncpa [#allocation4], 1 }

</bundles_post_ra>
